<compile_context>
chip_gen: v6e
topology: v6e:2x2x1
jax: 0.10.0
libtpu: 0.0.40
codegen_flags: <defaults>
</compile_context>

<pallas_src>
import jax
import jax.numpy as jnp
from jax import lax
from jax.experimental import pallas as pl
from jax.experimental.pallas import tpu as pltpu

# Demo sizes (scaled down from input_dim=40960, hidden_dim=256).
B = 256          # batch
TB = 128         # batch tile per grid step (>=128: lane-dense output, useful MXU M)
K = 8            # active features per bag (fixed bag size)
V = 512          # input_dim (feature vocabulary, per colour)
H = 64           # hidden_dim (embedding width; only used when folding params)
M = 32           # MLP hidden width (fixed at 32 in the module)
NACC = 4         # interleaved accumulators in the bag gather-sum

# Production: set to jnp.bfloat16 at real scale (V=40960) to halve the resident
# table; the kernel accumulates in f32 either way.  Demo keeps f32 for a tight
# check against the exact original-module math.
TABLE_DTYPE = jnp.float32

# TODO(synk): only the fixed-bag 2-D-index EmbeddingBag calling mode is
# implemented; the ragged (1-D input + offsets) mode would need per-sample
# bag lengths prefetched to SMEM and a dynamic inner loop.


def nnue_kernel(idx_ref,          # SMEM  (B_pad*2K,) int32   scalar prefetch, flat
                fused_ref,        # VMEM  (2V, M)             folded tables (resident)
                b1_ref,           # VMEM  (1, M)
                w2_ref,           # VMEM  (M, M)
                b2_ref,           # VMEM  (1, M)
                w3_ref,           # VMEM  (1, M)              W3 transposed row
                b3_ref,           # SMEM  (1, 1)              f32 scalar
                out_ref,          # VMEM  (1, TB)             lane-dense output tile
                h1_ref):          # VMEM  (TB, M) f32         scratch
    i = pl.program_id(0)
    bag = 2 * K
    tile_base = i * (TB * bag)            # flat offset of this tile's first index

    def sample_body(j, carry):
        row_base = tile_base + j * bag    # one mul+add per sample, hoisted from k-loop
        # NACC interleaved accumulators break the serial add chain; the tiny
        # bag loop (16 entries) stays statically unrolled.
        accs = [fused_ref[pl.ds(idx_ref[row_base + k], 1), :].astype(jnp.float32)
                for k in range(NACC)]
        for k in range(NACC, bag):
            r = idx_ref[row_base + k]
            accs[k % NACC] = accs[k % NACC] + fused_ref[pl.ds(r, 1), :].astype(jnp.float32)
        acc = (accs[0] + accs[1]) + (accs[2] + accs[3])
        h1_ref[pl.ds(j, 1), :] = acc      # write finished row into VMEM scratch
        return carry

    lax.fori_loop(0, TB, sample_body, jnp.int32(0))

    # Linear1 bias + ReLU (the Linear1 weight is already folded into the table).
    h1 = jnp.maximum(h1_ref[...] + b1_ref[...], 0.0)                    # (TB, M)

    # Linear(32 -> 32) + ReLU on the MXU, f32 accumulation.
    h2 = jnp.dot(h1, w2_ref[...], preferred_element_type=jnp.float32) + b2_ref[...]
    h2 = jnp.maximum(h2, 0.0)

    # Linear(32 -> 1) as a lane reduction; store lane-dense (batch on lanes).
    out_row = jnp.sum(h2 * w3_ref[...], axis=-1)                        # (TB,)
    out_ref[...] = out_row.reshape(1, TB) + b3_ref[0, 0]


def init_params(key):
    """Deterministic params mirroring the PyTorch module's shapes/init."""
    ks = jax.random.split(key, 5)

    def lin_init(k, fan_in, fan_out):
        bound = 1.0 / jnp.sqrt(fan_in)
        kw, kb = jax.random.split(k)
        w = jax.random.uniform(kw, (fan_in, fan_out), jnp.float32, -bound, bound)
        b = jax.random.uniform(kb, (1, fan_out), jnp.float32, -bound, bound)
        return w, b

    w_tab = jax.random.normal(ks[0], (V, H), jnp.float32)   # white_embed.weight
    b_tab = jax.random.normal(ks[1], (V, H), jnp.float32)   # black_embed.weight
    w1, b1 = lin_init(ks[2], 2 * H, M)                       # Linear(2H, 32)
    w2, b2 = lin_init(ks[3], M, M)                           # Linear(32, 32)
    w3, b3 = lin_init(ks[4], M, 1)                           # Linear(32, 1)
    return dict(w_tab=w_tab, b_tab=b_tab, w1=w1, b1=b1, w2=w2, b2=b2, w3=w3, b3=b3)


def prepare_inference_params(p):
    """Offline fold (exact in real arithmetic):
       concat([wv, bv]) @ W1 == wv @ W1[:H] + bv @ W1[H:], and the bag-sum
       commutes with the per-row matmul, so the tables absorb W1."""
    fused = jnp.concatenate([p['w_tab'] @ p['w1'][:H],
                             p['b_tab'] @ p['w1'][H:]], axis=0)         # (2V, M)
    return dict(fused_tab=fused.astype(TABLE_DTYPE),
                b1=p['b1'], w2=p['w2'], b2=p['b2'],
                w3_row=p['w3'].T,                                       # (1, M)
                b3=p['b3'])                                             # (1, 1)


def _vmem_limit_bytes():
    """Scoped-VMEM request derived from actual buffer sizes (+ headroom)."""
    table = 2 * V * M * jnp.dtype(TABLE_DTYPE).itemsize   # resident, single copy
    weights = (3 * M + M * M) * 4                         # b1, b2, w3_row, w2
    scratch = TB * M * 4                                  # h1 scratch
    out_blk = 2 * TB * 4                                  # double-buffered out tile
    total = table + weights + scratch + out_blk
    return min(128 << 20, max(8 << 20, 2 * total))


@jax.jit
def nnue_forward(white_idx, black_idx, ip):
    b = white_idx.shape[0]
    # Combined bag over the stacked table: black indices offset by +V.  Clip to
    # the valid range (PyTorch EmbeddingBag would raise on out-of-range; here
    # they are remapped — this only guards against malformed inputs).
    all_idx = jnp.concatenate([jnp.clip(white_idx, 0, V - 1),
                               jnp.clip(black_idx, 0, V - 1) + V],
                              axis=1).astype(jnp.int32)                 # (b, 2K)

    # Pad the batch to a multiple of TB (padded rows use index 0; sliced off).
    b_pad = pl.cdiv(b, TB) * TB
    if b_pad != b:
        all_idx = jnp.concatenate(
            [all_idx, jnp.zeros((b_pad - b, 2 * K), jnp.int32)], axis=0)
    idx_flat = all_idx.reshape(-1)                        # 1-D -> cheap SMEM padding

    vmem_spec = pl.BlockSpec(memory_space=pltpu.MemorySpace.VMEM)  # resident, no 2x buf
    smem_spec = pl.BlockSpec(memory_space=pltpu.MemorySpace.SMEM)

    out = pl.pallas_call(
        nnue_kernel,
        out_shape=jax.ShapeDtypeStruct((1, b_pad), jnp.float32),
        grid_spec=pltpu.PrefetchScalarGridSpec(
            num_scalar_prefetch=1,                        # idx_flat -> SMEM
            grid=(b_pad // TB,),
            in_specs=[
                vmem_spec,    # fused table (grid-invariant -> single resident copy)
                vmem_spec,    # b1
                vmem_spec,    # w2
                vmem_spec,    # b2
                vmem_spec,    # w3 row
                smem_spec,    # b3 scalar
            ],
            out_specs=pl.BlockSpec((1, TB), lambda i, idx: (0, i)),   # lane-dense
            scratch_shapes=[pltpu.VMEM((TB, M), jnp.float32)],
        ),
        compiler_params=pltpu.CompilerParams(
            # Batch tiles are independent.  On v7x switch this axis to
            # pltpu.CORE_PARALLEL if "parallel" does not core-shard on your
            # toolchain (budget one resident table copy per TC vs 64 MiB/TC).
            dimension_semantics=("parallel",),
            vmem_limit_bytes=_vmem_limit_bytes()),
    )(idx_flat, ip['fused_tab'], ip['b1'], ip['w2'], ip['b2'],
      ip['w3_row'], ip['b3'])
    return out[0, :b]                                     # (b,)  == .squeeze(1)


def nnue_forward_ref(white_idx, black_idx, p):
    """Plain-JAX reference implementing the ORIGINAL (unfused) module math."""
    wv = p['w_tab'][white_idx].sum(axis=1)                # EmbeddingBag(sum)
    bv = p['b_tab'][black_idx].sum(axis=1)
    x = jnp.concatenate([wv, bv], axis=-1)
    h1 = jax.nn.relu(x @ p['w1'] + p['b1'])
    h2 = jax.nn.relu(h1 @ p['w2'] + p['b2'])
    return (h2 @ p['w3'] + p['b3'])[:, 0]


if __name__ == "__main__":
    key = jax.random.PRNGKey(0)
    k_idx_w, k_idx_b, k_params = jax.random.split(key, 3)

    white_idx = jax.random.randint(k_idx_w, (B, K), 0, V, dtype=jnp.int32)
    black_idx = jax.random.randint(k_idx_b, (B, K), 0, V, dtype=jnp.int32)
    params = init_params(k_params)
    infer_params = prepare_inference_params(params)       # offline table fold

    out = nnue_forward(white_idx, black_idx, infer_params)
    out = jax.block_until_ready(out)

    ref = nnue_forward_ref(white_idx, black_idx, params)
    assert out.shape == (B,)
    tol = 1e-4 if TABLE_DTYPE == jnp.float32 else 5e-2
    assert jnp.allclose(out, ref, atol=tol, rtol=tol), (out, ref)

    print("KERNEL_OK")
</pallas_src>

<mosaic_0001>
module attributes {stable_mosaic.version = 11 : i64} {
  func.func @nnue_kernel(%arg0: i32, %arg1: memref<4096xi32, #tpu.memory_space<smem>>, %arg2: memref<1024x32xf32, #tpu.memory_space<vmem>>, %arg3: memref<1x32xf32, #tpu.memory_space<vmem>>, %arg4: memref<32x32xf32, #tpu.memory_space<vmem>>, %arg5: memref<1x32xf32, #tpu.memory_space<vmem>>, %arg6: memref<1x32xf32, #tpu.memory_space<vmem>>, %arg7: memref<1x1xf32, #tpu.memory_space<smem>>, %arg8: memref<1x128xf32, #tpu.memory_space<vmem>>, %arg9: memref<128x32xf32, #tpu.memory_space<vmem>>) attributes {dimension_semantics = [#tpu.dimension_semantics<parallel>], iteration_bounds = array<i64: 2>, scalar_prefetch = 1 : i64, scratch_operands = 1 : i64, tpu.core_type = #tpu.core_type<tc>, window_params = [{pipeline_mode = #tpu.pipeline_mode<synchronous>, transform_indices = @transform_0, window_bounds = array<i64: 1024, 32>}, {pipeline_mode = #tpu.pipeline_mode<synchronous>, transform_indices = @transform_1, window_bounds = array<i64: 1, 32>}, {pipeline_mode = #tpu.pipeline_mode<synchronous>, transform_indices = @transform_2, window_bounds = array<i64: 32, 32>}, {pipeline_mode = #tpu.pipeline_mode<synchronous>, transform_indices = @transform_3, window_bounds = array<i64: 1, 32>}, {pipeline_mode = #tpu.pipeline_mode<synchronous>, transform_indices = @transform_4, window_bounds = array<i64: 1, 32>}, {transform_indices = @transform_5, window_bounds = array<i64: 1, 1>}, {transform_indices = @transform_6, window_bounds = array<i64: 1, 128>}]} {
    %c2048_i32 = arith.constant 2048 : i32
    %0 = arith.muli %arg0, %c2048_i32 : i32
    %c0_i32 = arith.constant 0 : i32
    %c128_i32 = arith.constant 128 : i32
    %1 = arith.addi %c0_i32, %c128_i32 : i32
    %c1_i32 = arith.constant 1 : i32
    scf.for %arg10 = %c0_i32 to %1 step %c1_i32  : i32 {
      %c16_i32 = arith.constant 16 : i32
      %24 = arith.muli %arg10, %c16_i32 : i32
      %25 = arith.addi %0, %24 : i32
      %c0_i32_17 = arith.constant 0 : i32
      %26 = arith.addi %25, %c0_i32_17 : i32
      %27 = arith.index_cast %26 : i32 to index
      %28 = memref.load %arg1[%27] : memref<4096xi32, #tpu.memory_space<smem>>
      %29 = arith.index_cast %28 : i32 to index
      %c0_18 = arith.constant 0 : index
      %30 = vector.load %arg2[%29, %c0_18] : memref<1024x32xf32, #tpu.memory_space<vmem>>, vector<1x32xf32>
      %c1_i32_19 = arith.constant 1 : i32
      %31 = arith.addi %25, %c1_i32_19 : i32
      %32 = arith.index_cast %31 : i32 to index
      %33 = memref.load %arg1[%32] : memref<4096xi32, #tpu.memory_space<smem>>
      %34 = arith.index_cast %33 : i32 to index
      %c0_20 = arith.constant 0 : index
      %35 = vector.load %arg2[%34, %c0_20] : memref<1024x32xf32, #tpu.memory_space<vmem>>, vector<1x32xf32>
      %c2_i32 = arith.constant 2 : i32
      %36 = arith.addi %25, %c2_i32 : i32
      %37 = arith.index_cast %36 : i32 to index
      %38 = memref.load %arg1[%37] : memref<4096xi32, #tpu.memory_space<smem>>
      %39 = arith.index_cast %38 : i32 to index
      %c0_21 = arith.constant 0 : index
      %40 = vector.load %arg2[%39, %c0_21] : memref<1024x32xf32, #tpu.memory_space<vmem>>, vector<1x32xf32>
      %c3_i32 = arith.constant 3 : i32
      %41 = arith.addi %25, %c3_i32 : i32
      %42 = arith.index_cast %41 : i32 to index
      %43 = memref.load %arg1[%42] : memref<4096xi32, #tpu.memory_space<smem>>
      %44 = arith.index_cast %43 : i32 to index
      %c0_22 = arith.constant 0 : index
      %45 = vector.load %arg2[%44, %c0_22] : memref<1024x32xf32, #tpu.memory_space<vmem>>, vector<1x32xf32>
      %c4_i32 = arith.constant 4 : i32
      %46 = arith.addi %25, %c4_i32 : i32
      %47 = arith.index_cast %46 : i32 to index
      %48 = memref.load %arg1[%47] : memref<4096xi32, #tpu.memory_space<smem>>
      %49 = arith.index_cast %48 : i32 to index
      %c0_23 = arith.constant 0 : index
      %50 = vector.load %arg2[%49, %c0_23] : memref<1024x32xf32, #tpu.memory_space<vmem>>, vector<1x32xf32>
      %51 = arith.addf %30, %50 : vector<1x32xf32>
      %c5_i32 = arith.constant 5 : i32
      %52 = arith.addi %25, %c5_i32 : i32
      %53 = arith.index_cast %52 : i32 to index
      %54 = memref.load %arg1[%53] : memref<4096xi32, #tpu.memory_space<smem>>
      %55 = arith.index_cast %54 : i32 to index
      %c0_24 = arith.constant 0 : index
      %56 = vector.load %arg2[%55, %c0_24] : memref<1024x32xf32, #tpu.memory_space<vmem>>, vector<1x32xf32>
      %57 = arith.addf %35, %56 : vector<1x32xf32>
      %c6_i32 = arith.constant 6 : i32
      %58 = arith.addi %25, %c6_i32 : i32
      %59 = arith.index_cast %58 : i32 to index
      %60 = memref.load %arg1[%59] : memref<4096xi32, #tpu.memory_space<smem>>
      %61 = arith.index_cast %60 : i32 to index
      %c0_25 = arith.constant 0 : index
      %62 = vector.load %arg2[%61, %c0_25] : memref<1024x32xf32, #tpu.memory_space<vmem>>, vector<1x32xf32>
      %63 = arith.addf %40, %62 : vector<1x32xf32>
      %c7_i32 = arith.constant 7 : i32
      %64 = arith.addi %25, %c7_i32 : i32
      %65 = arith.index_cast %64 : i32 to index
      %66 = memref.load %arg1[%65] : memref<4096xi32, #tpu.memory_space<smem>>
      %67 = arith.index_cast %66 : i32 to index
      %c0_26 = arith.constant 0 : index
      %68 = vector.load %arg2[%67, %c0_26] : memref<1024x32xf32, #tpu.memory_space<vmem>>, vector<1x32xf32>
      %69 = arith.addf %45, %68 : vector<1x32xf32>
      %c8_i32 = arith.constant 8 : i32
      %70 = arith.addi %25, %c8_i32 : i32
      %71 = arith.index_cast %70 : i32 to index
      %72 = memref.load %arg1[%71] : memref<4096xi32, #tpu.memory_space<smem>>
      %73 = arith.index_cast %72 : i32 to index
      %c0_27 = arith.constant 0 : index
      %74 = vector.load %arg2[%73, %c0_27] : memref<1024x32xf32, #tpu.memory_space<vmem>>, vector<1x32xf32>
      %75 = arith.addf %51, %74 : vector<1x32xf32>
      %c9_i32 = arith.constant 9 : i32
      %76 = arith.addi %25, %c9_i32 : i32
      %77 = arith.index_cast %76 : i32 to index
      %78 = memref.load %arg1[%77] : memref<4096xi32, #tpu.memory_space<smem>>
      %79 = arith.index_cast %78 : i32 to index
      %c0_28 = arith.constant 0 : index
      %80 = vector.load %arg2[%79, %c0_28] : memref<1024x32xf32, #tpu.memory_space<vmem>>, vector<1x32xf32>
      %81 = arith.addf %57, %80 : vector<1x32xf32>
      %c10_i32 = arith.constant 10 : i32
      %82 = arith.addi %25, %c10_i32 : i32
      %83 = arith.index_cast %82 : i32 to index
      %84 = memref.load %arg1[%83] : memref<4096xi32, #tpu.memory_space<smem>>
      %85 = arith.index_cast %84 : i32 to index
      %c0_29 = arith.constant 0 : index
      %86 = vector.load %arg2[%85, %c0_29] : memref<1024x32xf32, #tpu.memory_space<vmem>>, vector<1x32xf32>
      %87 = arith.addf %63, %86 : vector<1x32xf32>
      %c11_i32 = arith.constant 11 : i32
      %88 = arith.addi %25, %c11_i32 : i32
      %89 = arith.index_cast %88 : i32 to index
      %90 = memref.load %arg1[%89] : memref<4096xi32, #tpu.memory_space<smem>>
      %91 = arith.index_cast %90 : i32 to index
      %c0_30 = arith.constant 0 : index
      %92 = vector.load %arg2[%91, %c0_30] : memref<1024x32xf32, #tpu.memory_space<vmem>>, vector<1x32xf32>
      %93 = arith.addf %69, %92 : vector<1x32xf32>
      %c12_i32 = arith.constant 12 : i32
      %94 = arith.addi %25, %c12_i32 : i32
      %95 = arith.index_cast %94 : i32 to index
      %96 = memref.load %arg1[%95] : memref<4096xi32, #tpu.memory_space<smem>>
      %97 = arith.index_cast %96 : i32 to index
      %c0_31 = arith.constant 0 : index
      %98 = vector.load %arg2[%97, %c0_31] : memref<1024x32xf32, #tpu.memory_space<vmem>>, vector<1x32xf32>
      %99 = arith.addf %75, %98 : vector<1x32xf32>
      %c13_i32 = arith.constant 13 : i32
      %100 = arith.addi %25, %c13_i32 : i32
      %101 = arith.index_cast %100 : i32 to index
      %102 = memref.load %arg1[%101] : memref<4096xi32, #tpu.memory_space<smem>>
      %103 = arith.index_cast %102 : i32 to index
      %c0_32 = arith.constant 0 : index
      %104 = vector.load %arg2[%103, %c0_32] : memref<1024x32xf32, #tpu.memory_space<vmem>>, vector<1x32xf32>
      %105 = arith.addf %81, %104 : vector<1x32xf32>
      %c14_i32 = arith.constant 14 : i32
      %106 = arith.addi %25, %c14_i32 : i32
      %107 = arith.index_cast %106 : i32 to index
      %108 = memref.load %arg1[%107] : memref<4096xi32, #tpu.memory_space<smem>>
      %109 = arith.index_cast %108 : i32 to index
      %c0_33 = arith.constant 0 : index
      %110 = vector.load %arg2[%109, %c0_33] : memref<1024x32xf32, #tpu.memory_space<vmem>>, vector<1x32xf32>
      %111 = arith.addf %87, %110 : vector<1x32xf32>
      %c15_i32 = arith.constant 15 : i32
      %112 = arith.addi %25, %c15_i32 : i32
      %113 = arith.index_cast %112 : i32 to index
      %114 = memref.load %arg1[%113] : memref<4096xi32, #tpu.memory_space<smem>>
      %115 = arith.index_cast %114 : i32 to index
      %c0_34 = arith.constant 0 : index
      %116 = vector.load %arg2[%115, %c0_34] : memref<1024x32xf32, #tpu.memory_space<vmem>>, vector<1x32xf32>
      %117 = arith.addf %93, %116 : vector<1x32xf32>
      %118 = arith.addf %99, %105 : vector<1x32xf32>
      %119 = arith.addf %111, %117 : vector<1x32xf32>
      %120 = arith.addf %118, %119 : vector<1x32xf32>
      %121 = arith.index_cast %arg10 : i32 to index
      %c0_35 = arith.constant 0 : index
      %122 = vector.load %arg9[%121, %c0_35] : memref<128x32xf32, #tpu.memory_space<vmem>>, vector<1x32xf32>
      tpu.vector_store %arg9[%121, %c0_35], %120 {strides = array<i32>} : memref<128x32xf32, #tpu.memory_space<vmem>>, vector<1x32xf32>,
    }
    %c128_i32_0 = arith.constant 128 : i32
    %c0 = arith.constant 0 : index
    %c0_1 = arith.constant 0 : index
    %2 = vector.load %arg9[%c0, %c0_1] : memref<128x32xf32, #tpu.memory_space<vmem>>, vector<128x32xf32>
    %c0_2 = arith.constant 0 : index
    %c0_3 = arith.constant 0 : index
    %3 = vector.load %arg3[%c0_2, %c0_3] : memref<1x32xf32, #tpu.memory_space<vmem>>, vector<1x32xf32>
    %4 = vector.broadcast %3 : vector<1x32xf32> to vector<128x32xf32>
    %5 = arith.addf %2, %4 : vector<128x32xf32>
    %cst = arith.constant 0.000000e+00 : f32
    %6 = vector.broadcast %cst : f32 to vector<128x32xf32>
    %7 = arith.maximumf %5, %6 : vector<128x32xf32>
    %c0_4 = arith.constant 0 : index
    %c0_5 = arith.constant 0 : index
    %8 = vector.load %arg4[%c0_4, %c0_5] : memref<32x32xf32, #tpu.memory_space<vmem>>, vector<32x32xf32>
    %cst_6 = arith.constant dense<0.000000e+00> : vector<128x32xf32>
    %9 = tpu.matmul %7, %8, %cst_6 {dimension_numbers = #tpu.dot_dimension_numbers<[1], [0], [0], [1], [0, 0, 1, 1], [], []>} : vector<128x32xf32>, vector<32x32xf32>, vector<128x32xf32> -> vector<128x32xf32>
    %c0_7 = arith.constant 0 : index
    %c0_8 = arith.constant 0 : index
    %10 = vector.load %arg5[%c0_7, %c0_8] : memref<1x32xf32, #tpu.memory_space<vmem>>, vector<1x32xf32>
    %11 = vector.broadcast %10 : vector<1x32xf32> to vector<128x32xf32>
    %12 = arith.addf %9, %11 : vector<128x32xf32>
    %cst_9 = arith.constant 0.000000e+00 : f32
    %13 = vector.broadcast %cst_9 : f32 to vector<128x32xf32>
    %14 = arith.maximumf %12, %13 : vector<128x32xf32>
    %c0_10 = arith.constant 0 : index
    %c0_11 = arith.constant 0 : index
    %15 = vector.load %arg6[%c0_10, %c0_11] : memref<1x32xf32, #tpu.memory_space<vmem>>, vector<1x32xf32>
    %16 = vector.broadcast %15 : vector<1x32xf32> to vector<128x32xf32>
    %17 = arith.mulf %14, %16 : vector<128x32xf32>
    %cst_12 = arith.constant dense<0.000000e+00> : vector<128xf32>
    %18 = vector.multi_reduction <add>, %17, %cst_12 [1] : vector<128x32xf32> to vector<128xf32>
    %19 = vector.shape_cast %18 : vector<128xf32> to vector<1x128xf32>
    %c0_13 = arith.constant 0 : index
    %c0_14 = arith.constant 0 : index
    %20 = memref.load %arg7[%c0_13, %c0_14] : memref<1x1xf32, #tpu.memory_space<smem>>
    %21 = vector.broadcast %20 : f32 to vector<1x128xf32>
    %22 = arith.addf %19, %21 : vector<1x128xf32>
    %c0_15 = arith.constant 0 : index
    %c0_16 = arith.constant 0 : index
    %23 = vector.load %arg8[%c0_15, %c0_16] : memref<1x128xf32, #tpu.memory_space<vmem>>, vector<1x128xf32>
    tpu.vector_store %arg8[%c0_15, %c0_16], %22 {strides = array<i32>} : memref<1x128xf32, #tpu.memory_space<vmem>>, vector<1x128xf32>,
    return
  }
  func.func @transform_0(%arg0: i32, %arg1: memref<4096xi32, #tpu.memory_space<smem>>) -> (i32, i32) {
    %c0_i32 = arith.constant 0 : i32
    %c0_i32_0 = arith.constant 0 : i32
    %c0_i32_1 = arith.constant 0 : i32
    return %c0_i32, %c0_i32_0 : i32, i32
  }
  func.func @transform_1(%arg0: i32, %arg1: memref<4096xi32, #tpu.memory_space<smem>>) -> (i32, i32) {
    %c0_i32 = arith.constant 0 : i32
    %c0_i32_0 = arith.constant 0 : i32
    %c0_i32_1 = arith.constant 0 : i32
    return %c0_i32, %c0_i32_0 : i32, i32
  }
  func.func @transform_2(%arg0: i32, %arg1: memref<4096xi32, #tpu.memory_space<smem>>) -> (i32, i32) {
    %c0_i32 = arith.constant 0 : i32
    %c0_i32_0 = arith.constant 0 : i32
    %c0_i32_1 = arith.constant 0 : i32
    return %c0_i32, %c0_i32_0 : i32, i32
  }
  func.func @transform_3(%arg0: i32, %arg1: memref<4096xi32, #tpu.memory_space<smem>>) -> (i32, i32) {
    %c0_i32 = arith.constant 0 : i32
    %c0_i32_0 = arith.constant 0 : i32
    %c0_i32_1 = arith.constant 0 : i32
    return %c0_i32, %c0_i32_0 : i32, i32
  }
  func.func @transform_4(%arg0: i32, %arg1: memref<4096xi32, #tpu.memory_space<smem>>) -> (i32, i32) {
    %c0_i32 = arith.constant 0 : i32
    %c0_i32_0 = arith.constant 0 : i32
    %c0_i32_1 = arith.constant 0 : i32
    return %c0_i32, %c0_i32_0 : i32, i32
  }
  func.func @transform_5(%arg0: i32, %arg1: memref<4096xi32, #tpu.memory_space<smem>>) -> (i32, i32) {
    %c0_i32 = arith.constant 0 : i32
    %c0_i32_0 = arith.constant 0 : i32
    %c0_i32_1 = arith.constant 0 : i32
    return %c0_i32, %c0_i32_0 : i32, i32
  }
  func.func @transform_6(%arg0: i32, %arg1: memref<4096xi32, #tpu.memory_space<smem>>) -> (i32, i32) {
    %c0_i32 = arith.constant 0 : i32
    %c0_i32_0 = arith.constant 0 : i32
    return %c0_i32, %arg0 : i32, i32
  }
}

</mosaic_0001>

<bundles_post_ra>
// kernel: nnue_forward.1
= control target key start
LH: loop header
LB: loop body
LE: loop exit
PB: predicated region body
PF: predicated region fallthrough
CT: control target
= control target key end

     0   :  { %s1533_s0 = inlined_call_operand.vmem [shape: s32[4096], index: 0, kind: input, shape index: {}]   ;;  %s1534_s1 = inlined_call_operand.vmem [shape: f32[1024,32], index: 1, kind: input, shape index: {}]   ;;  %s1535_s2 = inlined_call_operand.vmem [shape: f32[1,32], index: 2, kind: input, shape index: {}]   ;;  %s1536_s3 = inlined_call_operand.vmem [shape: f32[32,32], index: 3, kind: input, shape index: {}]   ;;  %s1537_s4 = inlined_call_operand.vmem [shape: f32[1,32], index: 4, kind: input, shape index: {}]   ;;  %s1538_s5 = inlined_call_operand.vmem [shape: f32[1,32], index: 5, kind: input, shape index: {}]   ;;  %s1539_s6 = inlined_call_operand.<no memory space> [shape: f32[1,1], index: 6, kind: input, shape index: {}]   ;;  %s1540_s7 = inlined_call_operand.hbm [shape: f32[1,256], index: 7, kind: output, shape index: {}]  }
   0x1   :  { %1554 = sst [smem:[#allocation20_spill]] %s1538_s5  ;;  %s12_s26 = sshll.u32 %s1533_s0, 4  ;;  %s13_s26 = int_to_ptr.vmem [resolvable:$true] %s12_s26 }
   0x2   :  { %1555 = sst [smem:[#allocation21_spill]] %s1540_s7  ;;  %s1034_s29 = scalar_lea.vmem %s13_s26, 512 }
   0x3   :  { %16 = sst [smem:[#allocation5]] %s1539_s6  ;;  %p1035_p0 = scmp.ne.s32.totalorder %s13_s26, %s1034_s29 }
   0x4   :  { %p1039_p1 = scmp.lt.s32.totalorder %s13_s26, %s13_s26  ;;  %p1040_p2 = scmp.lt.s32.totalorder %s1034_s29, %s1034_s29 }
   0x6   :  { %p1041_p3 = por %p1040_p2, %p1039_p1 }
   0x8   :  { %p1042_p4 = pnand %p1041_p3, %p1035_p0 }
   0xa   :  { %1045 = shalt.err (!%p1042_p4)  }
   0xb   :  { %s1118_s30 = smov [#allocation4]  }
   0xc   :  { %15 = dma.vmem_to_smem %s13_s26, 512, %s1118_s30, [#allocation3] }
   0xd   :  { %1092 = dma.done.wait [#allocation3], 512 }
   0xe   :  { %1093 = vsyncadd [#allocation3], 4294966784 }
   0xf   :  { %18 = sfence }
  0x10   :  { %19 = vsyncpa [#allocation7], 0 }
  0x11   :  { %21 = vsyncpa [#allocation7 + $0x1], 0  ;;  %s1166_s0 = smov 0   ;;  %s1168_s8 = smov 0  }
  0x12   :  { %s1170_s6 = smov 0   ;;  %s1172_s9 = smov 0  }
  0x13 LB: > { %1556 = sst [smem:[#allocation10_spill]] %s1100_s0  ;;  %s1187_s10 = sadd.s32 4294967295, %s1112_s9   ;;  %s1112_s9 = sphi %s1172_s9, %s1580_s9   ;;  %s1108_s6 = sphi %s1170_s6, %s1583_s6   ;;  %s1104_s8 = sphi %s1168_s8, %s1582_s8   ;;  %s1100_s0 = sphi %s1166_s0, %s1581_s0  }
  0x14   : > { %1557 = sst [smem:[#allocation11_spill]] %s1104_s8  ;;  %s899_s11 = sadd.s32 4294967294, %s1112_s9  }
  0x15   : > { %1558 = sst [smem:[#allocation12_spill]] %s1108_s6  ;;  %s1191_s12 = sadd.s32 1, %s1112_s9  }
  0x16   : > { %1559 = sst [smem:[#allocation13_spill]] %s1112_s9  ;;  %s160_s13 = sadd.s32 1, %s1108_s6 }
  0x17   : > { %1560 = sst [smem:[#allocation14_spill]] %s1187_s10  ;;  %s157_s14 = ssub.s32 %s1112_s9, %s1191_s12 }
  0x18   : > { %1561 = sst [smem:[#allocation15_spill]] %s1191_s12  ;;  %p170_p5 = scmp.ne.s32.totalorder %s1108_s6, %s1104_s8 }
  0x19   : > { %p158_p6 = scmp.eq.s32.totalorder %s157_s14, 0  ;;  %p171_p7 = scmp.eq.s32.totalorder %s1187_s10, 1 }
  0x1a   : > { %p176_p8 = scmp.ne.s32.totalorder %s1104_s8, %s1100_s0  ;;  %p177_p9 = scmp.eq.s32.totalorder %s899_s11, 1 }
  0x1b   : > { %s1202_s15 = scalar_select %p158_p6, %s1108_s6, %s160_s13  }
  0x1c   : > { %p1204_p10 = por %p171_p7, %p170_p5  ;;  %p1208_p11 = por %p177_p9, %p176_p8 }
  0x1d   : > { %1562 = sst [smem:[#allocation16_spill]] %s1202_s15  ;;  %p901_p12 = scmp.ge.s32.totalorder %s1112_s9, 1 }
  0x1e   : > { %s1563_s16 = scalar_select %p1204_p10, 1, 0 }
  0x1f   : > { %s1565_s17 = scalar_select %p1208_p11, 1, 0 }
  0x20   : > { %1564 = sst [smem:[#allocation17_spill]] %s1563_s16  ;;  %p213_p13 = scmp.lt.s32.totalorder %s1112_s9, 3 }
  0x21   : > { %1566 = sst [smem:[#allocation18_spill]] %s1565_s17 }
  0x22   : > { %p214_p0 = pnand %p901_p12, %p213_p13 }
  0x24   : > { %217 = sbr.rel (%p214_p0) target bundleno = 484 (0x1e4), region = 44 }
  0x29   : > { %s1541_s18 = sand.u32 1, %s1104_s8   ;;  %s1220_s21 = smov 0  }
  0x2a   : > { %s1218_s20 = scalar_lea.vmem [#allocation6], %s1541_s18 }
  0x2b   : > { %1567 = sst [smem:[#allocation19_spill]] %s1218_s20 }
  0x2c LB: >> { %s1568_s10 = sld [smem:[#allocation14_spill]]  ;;  %s903_s22 = sshll.u32 %s1116_s21, 4  ;;  %vm325_vm0 = vcmask 253952   ;;  %s1116_s21 = sphi %s1220_s21, %s243_s21  }
  0x32   : >> { %s1569_s19 = sshll.u32 %s1568_s10, 11 }
  0x33   : >> { %s1228_s23 = sadd.s32 %s903_s22, %s1569_s19 }
  0x34   : >> { %s246_s24 = sld [smem:[#allocation4 + %s1228_s23]]  ;;  %s249_s25 = sadd.s32 1, %s1228_s23 }
  0x35   : >> { %s250_s26 = sld [smem:[#allocation4 + %s249_s25]]  ;;  %s253_s27 = sadd.s32 2, %s1228_s23 }
  0x36   : >> { %s1233_s28 = sld [smem:[#allocation4 + %s253_s27]]  ;;  %s257_s29 = sadd.s32 3, %s1228_s23 }
  0x37   : >> { %s1236_s30 = sld [smem:[#allocation4 + %s257_s29]]  ;;  %s261_s11 = sadd.s32 4, %s1228_s23 }
  0x38   : >> { %s262_s13 = sld [smem:[#allocation4 + %s261_s11]]  ;;  %s266_s14 = sadd.s32 5, %s1228_s23 }
  0x39   : >> { %s267_s22 = sld [smem:[#allocation4 + %s266_s14]]  ;;  %s271_s19 = sadd.s32 6, %s1228_s23 }
  0x3a   : >> { %s247_s6 = scalar_lea.vmem %s1534_s1, %s246_s24  ;;  %s272_s25 = sld [smem:[#allocation4 + %s271_s19]] }
  0x3b   : >> { %s251_s17 = scalar_lea.vmem %s1534_s1, %s250_s26  ;;  %s276_s29 = sadd.s32 7, %s1228_s23  ;;  %v248_v0 = vld [vmem:[%s247_s6] sm:$0x1] }
  0x3c   : >> { %s255_s7 = scalar_lea.vmem %s1534_s1, %s1233_s28  ;;  %s277_s11 = sld [smem:[#allocation4 + %s276_s29]]  ;;  %v252_v2 = vld [vmem:[%s251_s17] sm:$0x1] }
  0x3d   : >> { %s259_s8 = scalar_lea.vmem %s1534_s1, %s1236_s30  ;;  %s281_s20 = sadd.s32 8, %s1228_s23  ;;  %v256_v3 = vld [vmem:[%s255_s7] sm:$0x1] }
  0x3e   : >> { %s263_s19 = scalar_lea.vmem %s1534_s1, %s262_s13  ;;  %s282_s24 = sld [smem:[#allocation4 + %s281_s20]]  ;;  %v260_v5 = vld [vmem:[%s259_s8] sm:$0x1] }
  0x3f   : >> { %s268_s26 = scalar_lea.vmem %s1534_s1, %s267_s22  ;;  %s286_s10 = sadd.s32 9, %s1228_s23  ;;  %v264_v1 = vld [vmem:[%s263_s19] sm:$0x1] }
  0x40   : >> { %s273_s9 = scalar_lea.vmem %s1534_s1, %s272_s25  ;;  %s287_s28 = sld [smem:[#allocation4 + %s286_s10]]  ;;  %v269_v4 = vld [vmem:[%s268_s26] sm:$0x1]  ;;  %v265_v6 = vadd.f32 %v264_v1, %v248_v0 }
  0x41   : >> { %s291_s16 = sadd.s32 10, %s1228_s23  ;;  %s296_s30 = sadd.s32 11, %s1228_s23  ;;  %v274_v7 = vld [vmem:[%s273_s9] sm:$0x1]  ;;  %v270_v10 = vadd.f32 %v269_v4, %v252_v2 }
  0x42   : >> { %s278_s20 = scalar_lea.vmem %s1534_s1, %s277_s11  ;;  %s292_s14 = sld [smem:[#allocation4 + %s291_s16]]  ;;  %v275_v11 = vadd.f32 %v274_v7, %v256_v3 }
  0x43   : >> { %s297_s22 = sld [smem:[#allocation4 + %s296_s30]]  ;;  %s301_s15 = sadd.s32 12, %s1228_s23  ;;  %v279_v8 = vld [vmem:[%s278_s20] sm:$0x1] }
  0x44   : >> { %s283_s10 = scalar_lea.vmem %s1534_s1, %s282_s24  ;;  %s302_s25 = sld [smem:[#allocation4 + %s301_s15]]  ;;  %v280_v13 = vadd.f32 %v279_v8, %v260_v5 }
  0x45   : >> { %v284_v9 = vld [vmem:[%s283_s10] sm:$0x1]  ;;  %s306_s17 = sadd.s32 13, %s1228_s23  ;;  %s311_s18 = sadd.s32 14, %s1228_s23 }
  0x46   : >> { %s288_s7 = scalar_lea.vmem %s1534_s1, %s287_s28  ;;  %s307_s12 = sld [smem:[#allocation4 + %s306_s17]]  ;;  %v285_v14 = vadd.f32 %v284_v9, %v265_v6 }
  0x47   : >> { %v289_v12 = vld [vmem:[%s288_s7] sm:$0x1]  ;;  %s312_s8 = sld [smem:[#allocation4 + %s311_s18]]  ;;  %s316_s27 = sadd.s32 15, %s1228_s23 }
  0x48   : >> { %s293_s24 = scalar_lea.vmem %s1534_s1, %s292_s14  ;;  %s317_s9 = sld [smem:[#allocation4 + %s316_s27]]  ;;  %v290_v16 = vadd.f32 %v289_v12, %v270_v10 }
  0x49   : >> { %v294_v15 = vld [vmem:[%s293_s24] sm:$0x1]  ;;  %s298_s13 = scalar_lea.vmem %s1534_s1, %s297_s22  ;;  %s324_s18 = scalar_lea.vmem [#allocation2], %s1116_s21 }
  0x4a   : >> { %v299_v17 = vld [vmem:[%s298_s13] sm:$0x1]  ;;  %s303_s20 = scalar_lea.vmem %s1534_s1, %s302_s25  ;;  %v295_v18 = vadd.f32 %v294_v15, %v275_v11  ;;  %s243_s21 = sadd.s32 1, %s1116_s21  }
  0x4b   : >> { %v304_v19 = vld [vmem:[%s303_s20] sm:$0x1]  ;;  %v300_v20 = vadd.f32 %v299_v17, %v280_v13  ;;  %p240_p1 = scmp.ge.s32.totalorder %s243_s21, 128  }
  0x4c   : >> { %v305_v21 = vadd.f32 %v304_v19, %v285_v14  ;;  %s308_s14 = scalar_lea.vmem %s1534_s1, %s307_s12  ;;  %v385_v31 = vld [vmem:[%s1536_s3 + $0x18] sm:$0xff] (%p240_p1)  ;;  %v384_v32 = vld [vmem:[%s1536_s3 + $0x10] sm:$0xff] (%p240_p1)  ;;  %v383_v33 = vld [vmem:[%s1536_s3 + $0x8] sm:$0xff] (%p240_p1)  ;;  %vm393_vm1 = vcmask (%p240_p1), 261120   ;;  %s1570_s28 = sld [smem:[#allocation20_spill]] (%p240_p1)  ;;  %vm719_vm2 = vcmask (%p240_p1), 130112  }
  0x4d   : >> { %v309_v22 = vld [vmem:[%s308_s14] sm:$0x1]  ;;  %s313_s22 = scalar_lea.vmem %s1534_s1, %s312_s8  ;;  %946 = vmatprep.subr.mxu0 (%p240_p1), %v385_v31  ;;  %978 = vmatprep.subr.mxu1 (%p240_p1), %v385_v31  ;;  %s674_s29 = sld [smem:[#allocation5]] (%p240_p1)  ;;  %vm726_vm3 = vcmask (%p240_p1), 195712   ;;  %vm733_vm4 = vcmask (%p240_p1), 261312   ;;  %vm740_vm5 = vcmask (%p240_p1), 326912  }
  0x4e   : >> { %v310_v23 = vadd.f32 %v309_v22, %v290_v16  ;;  %v314_v24 = vld [vmem:[%s313_s22] sm:$0x1]  ;;  %s318_s25 = scalar_lea.vmem %s1534_s1, %s317_s9  ;;  %947 = vmatpush3.msra.mxu0 (%p240_p1), %v385_v31  ;;  %982 = vmatpush3.msra.mxu1 (%p240_p1), %v385_v31  ;;  %vm747_vm6 = vcmask (%p240_p1), 392512   ;;  %vm754_vm7 = vcmask (%p240_p1), 458112   ;;  %vm761_vm8 = vcmask (%p240_p1), 523712   ;;  %s1571_s20 = sld [smem:[#allocation14_spill]] (%p240_p1) }
  0x4f   : >> { %v315_v25 = vadd.f32 %v314_v24, %v295_v18  ;;  %v319_v26 = vld [vmem:[%s318_s25] sm:$0x1]  ;;  %948 = vmatprep.subr.mxu0 (%p240_p1), %v384_v32  ;;  %979 = vmatprep.subr.mxu1 (%p240_p1), %v384_v32  ;;  %vm768_vm9 = vcmask (%p240_p1), 589312   ;;  %vm775_vm10 = vcmask (%p240_p1), 654912   ;;  %vm782_vm11 = vcmask (%p240_p1), 720512   ;;  %s1572_s23 = sld [smem:[#allocation19_spill]] (%p240_p1) }
  0x50   : >> { %v320_v27 = vadd.f32 %v319_v26, %v300_v20  ;;  %v321_v28 = vadd.f32 %v310_v23, %v305_v21  ;;  %v1316_v35 = vld [vmem:[%s1535_s2] ss:$0 sm:$0xff] (%p240_p1)  ;;  %949 = vmatpush3.msra.mxu0 (%p240_p1), %v384_v32  ;;  %983 = vmatpush3.msra.mxu1 (%p240_p1), %v384_v32  ;;  %vm789_vm12 = vcmask (%p240_p1), 786112   ;;  %vm796_vm13 = vcmask (%p240_p1), 851712   ;;  %s1573_s15 = sld [smem:[#allocation11_spill]] (%p240_p1)  ;;  %s1119_s7 = smov (%p240_p1), [#allocation6]  }
  0x51   : > { %v382_v46 = vld [vmem:[%s1536_s3] sm:$0xff] (%p240_p1)  ;;  %950 = vmatprep.subr.mxu0 (%p240_p1), %v383_v33  ;;  %980 = vmatprep.subr.mxu1 (%p240_p1), %v383_v33  ;;  %vm803_vm14 = vcmask (%p240_p1), 917312   ;;  %vm810_vm15 = vcmask (%p240_p1), 982912   ;;  %s1575_s17 = sld [smem:[#allocation21_spill]] (%p240_p1)  ;;  %s1050_s12 = sshll.u32 (%p240_p1), %s1119_s7, 4  ;;  %s1051_s12 = int_to_ptr.vmem [resolvable:$false] %s1050_s12 }
  0x52   : >> { %v322_v29 = vadd.f32 %v320_v27, %v315_v25  ;;  %242 = sbr.rel (!%p240_p1) target bundleno = 44 (0x2c), region = 100  ;;  %951 = vmatpush3.msra.mxu0 (%p240_p1), %v383_v33  ;;  %984 = vmatpush3.msra.mxu1 (%p240_p1), %v383_v33  ;;  %v1356_v20 = vld [vmem:[%s1537_s4] ss:$0 sm:$0xff] (%p240_p1)  ;;  %s1052_s8 = scalar_lea.vmem (%p240_p1), %s1051_s12, 32 }
  0x53   : > { %952 = vmatprep.subr.mxu0 (%p240_p1), %v382_v46  ;;  %981 = vmatprep.subr.mxu1 (%p240_p1), %v382_v46  ;;  %v1365_v31 = vld [vmem:[%s1570_s28] ss:$0 sm:$0xff] (%p240_p1) }
  0x54   : >> { %v323_v30 = vadd.f32 %v322_v29, %v321_v28  ;;  %953 = vmatpush3.msra.mxu0 (%p240_p1), %v382_v46  ;;  %985 = vmatpush3.msra.mxu1 (%p240_p1), %v382_v46  ;;  %s923_s5 = sshll.u32 (%p240_p1), %s1571_s20, 4 }
  0x55   : > { %s834_s6 = sshll.u32 (%p240_p1), %s1572_s23, 4  ;;  %s835_s6 = int_to_ptr.vmem [resolvable:$true] %s834_s6 }
  0x56   : >> { %326 = vst.msk [vmem:[%s324_s18] sm:$0x1] %vm325_vm0, %v323_v30  ;;  %vm817_vm0 = vcmask (%p240_p1), 1048512   ;;  %s1576_s18 = sand.u32 (%p240_p1), 1, %s1573_s15   ;;  %s1046_s19 = scalar_lea.vmem (%p240_p1), %s835_s6, 16 }
  0x57   : > { %s1495_s25 = scalar_lea.hbm %s1575_s17, %s923_s5  ;;  %s822_s11 = scalar_lea.sflag [#allocation7], %s1576_s18 }
  0x58   : > { %p1047_p2 = scmp.ne.s32.totalorder %s835_s6, %s1046_s19  ;;  %p1053_p5 = scmp.lt.s32.totalorder %s835_s6, %s1051_s12 }
  0x59   : > { %p1054_p6 = scmp.lt.s32.totalorder %s1052_s8, %s1046_s19 }
  0x5a   : > { %p1048_p3 = pnand %p1047_p2, %p1204_p10 }
  0x5b   : > { %p1055_p7 = por %p1054_p6, %p1053_p5 }
  0x5c   : > { %p1049_p4 = pneg %p1048_p3 }
  0x5d   : > { %v327_v34 = vld [vmem:[#allocation2] sm:$0xff]  ;;  %v328_v38 = vld [vmem:[#allocation2 + $0x8] sm:$0xff]  ;;  %v329_v43 = vld [vmem:[#allocation2 + $0x10] sm:$0xff] }
  0x5e   : > { %v350_v36 = vadd.f32 %v1316_v35, %v327_v34  ;;  %v335_v37 = vld [vmem:[#allocation2 + $0x40] sm:$0xff]  ;;  %v336_v39 = vld [vmem:[#allocation2 + $0x48] sm:$0xff]  ;;  %v351_v41 = vadd.f32 %v1316_v35, %v328_v38  ;;  %v330_v44 = vld [vmem:[#allocation2 + $0x18] sm:$0xff]  ;;  %v352_v47 = vadd.f32 %v1316_v35, %v329_v43  ;;  %p1056_p8 = pnand %p1055_p7, %p1049_p4 }
  0x5f   : > { %v358_v40 = vadd.f32 %v1316_v35, %v335_v37  ;;  %v359_v42 = vadd.f32 %v1316_v35, %v336_v39  ;;  %v337_v45 = vld [vmem:[#allocation2 + $0x50] sm:$0xff]  ;;  %v338_v49 = vld [vmem:[#allocation2 + $0x58] sm:$0xff]  ;;  %v331_v50 = vld [vmem:[#allocation2 + $0x20] sm:$0xff]  ;;  %v353_v56 = vadd.f32 %v1316_v35, %v330_v44 }
  0x60   : > { %v360_v48 = vadd.f32 %v1316_v35, %v337_v45  ;;  %v366_v51 = vmax.f32 %v350_v36, 0.0  ;;  %v339_v53 = vld [vmem:[#allocation2 + $0x60] sm:$0xff]  ;;  %v367_v54 = vmax.f32 %v351_v41, 0.0  ;;  %v361_v57 = vadd.f32 %v1316_v35, %v338_v49  ;;  %v332_v61 = vld [vmem:[#allocation2 + $0x28] sm:$0xff]  ;;  %v333_v63 = vld [vmem:[#allocation2 + $0x30] sm:$0xff] }
  0x61   : > { %v374_v52 = vmax.f32 %v358_v40, 0.0  ;;  %v375_v55 = vmax.f32 %v359_v42, 0.0  ;;  %v368_v58 = vmax.f32 %v352_v47, 0.0  ;;  %v354_v60 = vadd.f32 %v1316_v35, %v331_v50  ;;  %v340_v62 = vld [vmem:[#allocation2 + $0x68] sm:$0xff]  ;;  %v341_v1 = vld [vmem:[#allocation2 + $0x70] sm:$0xff]  ;;  %v334_v8 = vld [vmem:[#allocation2 + $0x38] sm:$0xff] }
  0x62   : > { %v376_v59 = vmax.f32 %v360_v48, 0.0  ;;  %v362_v0 = vadd.f32 %v1316_v35, %v339_v53  ;;  %954 = vmatprep.mubr.msk.f32.mxu0 %vm393_vm1, %v366_v51  ;;  %v369_v2 = vmax.f32 %v353_v56, 0.0  ;;  %v377_v3 = vmax.f32 %v361_v57, 0.0  ;;  %v342_v11 = vld [vmem:[#allocation2 + $0x78] sm:$0xff] }
  0x63   : > { %966 = vmatprep.mubr.msk.f32.mxu1 %vm393_vm1, %v374_v52  ;;  %955 = vmatmul.mubr.msk.f32.vlgmr.msra.gmra.mxu0 %vm393_vm1, %v367_v54  ;;  %v355_v4 = vadd.f32 %v1316_v35, %v332_v61  ;;  %v363_v5 = vadd.f32 %v1316_v35, %v340_v62  ;;  %v370_v6 = vmax.f32 %v354_v60, 0.0  ;;  %v356_v7 = vadd.f32 %v1316_v35, %v333_v63 }
  0x64   : > { %967 = vmatmul.mubr.msk.f32.vlgmr.msra.gmra.mxu1 %vm393_vm1, %v375_v55  ;;  %957 = vmatprep.mubr.msk.f32.mxu0 %vm393_vm1, %v368_v58  ;;  %v378_v9 = vmax.f32 %v362_v0, 0.0  ;;  %v364_v10 = vadd.f32 %v1316_v35, %v341_v1  ;;  %v357_v13 = vadd.f32 %v1316_v35, %v334_v8  ;;  %v365_v15 = vadd.f32 %v1316_v35, %v342_v11 }
  0x65   : > { %969 = vmatprep.mubr.msk.f32.mxu1 %vm393_vm1, %v376_v59  ;;  %v371_v12 = vmax.f32 %v355_v4, 0.0  ;;  %v379_v14 = vmax.f32 %v363_v5, 0.0  ;;  %v372_v16 = vmax.f32 %v356_v7, 0.0 }
  0x66   : > { %v380_v17 = vmax.f32 %v364_v10, 0.0  ;;  %v373_v18 = vmax.f32 %v357_v13, 0.0  ;;  %v381_v19 = vmax.f32 %v365_v15, 0.0 }
  0x67   : > { %958 = vmatmul.mubr.msk.f32.gmra.mxu0 %vm393_vm1, %v369_v2 }
  0x68   : > { %970 = vmatmul.mubr.msk.f32.gmra.mxu1 %vm393_vm1, %v377_v3  ;;  %960 = vmatprep.mubr.msk.f32.mxu0 %vm393_vm1, %v370_v6 }
  0x69   : > { %972 = vmatprep.mubr.msk.f32.mxu1 %vm393_vm1, %v378_v9 }
  0x6b   : > { %961 = vmatmul.mubr.msk.f32.gmra.mxu0 %vm393_vm1, %v371_v12 }
  0x6c   : > { %973 = vmatmul.mubr.msk.f32.gmra.mxu1 %vm393_vm1, %v379_v14  ;;  %963 = vmatprep.mubr.msk.f32.mxu0 %vm393_vm1, %v372_v16 }
  0x6d   : > { %975 = vmatprep.mubr.msk.f32.mxu1 %vm393_vm1, %v380_v17 }
  0x6f   : > { %964 = vmatmul.mubr.msk.f32.gmra.mxu0 %vm393_vm1, %v373_v18 }
  0x70   : > { %976 = vmatmul.mubr.msk.f32.gmra.mxu1 %vm393_vm1, %v381_v19 }
 0x123   : > { %v956_v21 = vpop.f32.mrf.mxu0 }
 0x124   : > { %v968_v22 = vpop.f32.mrf.mxu1  ;;  %v514_v23 = vadd.f32 %v956_v21, %v1356_v20 }
 0x125   : > { %v554_v24 = vadd.f32 %v968_v22, %v1356_v20  ;;  %v508_v25 = vpop.f32.mrf.mxu0 }
 0x126   : > { %v548_v26 = vpop.f32.mrf.mxu1  ;;  %v588_v27 = vmax.f32 %v514_v23, 0.0  ;;  %v509_v29 = vadd.f32 %v1356_v20, %v508_v25 }
 0x127   : > { %v596_v28 = vmax.f32 %v554_v24, 0.0  ;;  %v549_v30 = vadd.f32 %v1356_v20, %v548_v26  ;;  %v959_v32 = vpop.f32.mrf.mxu0 }
 0x128   : > { %v971_v33 = vpop.f32.mrf.mxu1  ;;  %v587_v34 = vmax.f32 %v509_v29, 0.0  ;;  %v524_v35 = vadd.f32 %v959_v32, %v1356_v20  ;;  %v611_v39 = vmul.f32 %v1365_v31, %v588_v27 }
 0x129   : > { %v564_v36 = vadd.f32 %v971_v33, %v1356_v20  ;;  %v518_v37 = vpop.f32.mrf.mxu0  ;;  %v619_v38 = vmul.f32 %v1365_v31, %v596_v28  ;;  %v595_v41 = vmax.f32 %v549_v30, 0.0 }
 0x12a   : > { %v558_v40 = vpop.f32.mrf.mxu1  ;;  %v590_v42 = vmax.f32 %v524_v35, 0.0  ;;  %v519_v43 = vadd.f32 %v1356_v20, %v518_v37  ;;  %v629_v46 = vsel %vm393_vm1, %v611_v39, 0.0  ;;  %v610_v49 = vmul.f32 %v1365_v31, %v587_v34 }
 0x12b   : > { %v598_v44 = vmax.f32 %v564_v36, 0.0  ;;  %v653_v45 = vsel %vm393_vm1, %v619_v38, 0.0  ;;  %v559_v47 = vadd.f32 %v1356_v20, %v558_v40  ;;  %v962_v48 = vpop.f32.mrf.mxu0  ;;  %630 = vadd.xlane.f32.xlu0 %v629_v46  ;;  %v618_v57 = vmul.f32 %v1365_v31, %v595_v41 }
 0x12c   : > { %654 = vadd.xlane.f32.xlu1 %v653_v45  ;;  %v613_v50 = vmul.f32 %v1365_v31, %v590_v42  ;;  %v974_v51 = vpop.f32.mrf.mxu1  ;;  %v589_v54 = vmax.f32 %v519_v43, 0.0  ;;  %v534_v56 = vadd.f32 %v962_v48, %v1356_v20  ;;  %v626_v59 = vsel %vm393_vm1, %v610_v49, 0.0 }
 0x12d   : > { %v528_v52 = vpop.f32.mrf.mxu0  ;;  %v621_v53 = vmul.f32 %v1365_v31, %v598_v44  ;;  %v597_v58 = vmax.f32 %v559_v47, 0.0  ;;  %v650_v2 = vsel %vm393_vm1, %v618_v57, 0.0  ;;  %v574_v9 = vadd.f32 %v974_v51, %v1356_v20 }
 0x12e   : > { %v635_v55 = vsel %vm393_vm1, %v613_v50, 0.0  ;;  %v529_v60 = vadd.f32 %v1356_v20, %v528_v52  ;;  %v568_v62 = vpop.f32.mrf.mxu1  ;;  %v592_v1 = vmax.f32 %v534_v56, 0.0  ;;  %v612_v3 = vmul.f32 %v1365_v31, %v589_v54 }
 0x12f   : > { %v965_v61 = vpop.f32.mrf.mxu0  ;;  %627 = vadd.xlane.f32.xlu0 %v626_v59  ;;  %v659_v63 = vsel %vm393_vm1, %v621_v53, 0.0  ;;  %v620_v7 = vmul.f32 %v1365_v31, %v597_v58  ;;  %v569_v11 = vadd.f32 %v1356_v20, %v568_v62  ;;  %v600_v18 = vmax.f32 %v574_v9, 0.0 }
 0x130   : > { %636 = vadd.xlane.f32.xlu1 %v635_v55  ;;  %v591_v4 = vmax.f32 %v529_v60, 0.0  ;;  %v544_v5 = vadd.f32 %v965_v61, %v1356_v20  ;;  %v977_v8 = vpop.f32.mrf.mxu1  ;;  %v632_v10 = vsel %vm393_vm1, %v612_v3, 0.0  ;;  %v615_v12 = vmul.f32 %v1365_v31, %v592_v1 }
 0x131   : > { %v538_v0 = vpop.f32.mrf.mxu0  ;;  %v656_v15 = vsel %vm393_vm1, %v620_v7, 0.0  ;;  %v599_v19 = vmax.f32 %v569_v11, 0.0  ;;  %v584_v21 = vadd.f32 %v977_v8, %v1356_v20  ;;  %v623_v28 = vmul.f32 %v1365_v31, %v600_v18 }
 0x132   : > { %v539_v6 = vadd.f32 %v1356_v20, %v538_v0  ;;  %v594_v13 = vmax.f32 %v544_v5, 0.0  ;;  %v614_v16 = vmul.f32 %v1365_v31, %v591_v4  ;;  %v578_v17 = vpop.f32.mrf.mxu1  ;;  %v641_v22 = vsel %vm393_vm1, %v615_v12, 0.0 }
 0x133   : > { %651 = vadd.xlane.f32.xlu0 %v650_v2  ;;  %v579_v24 = vadd.f32 %v1356_v20, %v578_v17  ;;  %v602_v27 = vmax.f32 %v584_v21, 0.0  ;;  %v622_v33 = vmul.f32 %v1365_v31, %v599_v19  ;;  %v665_v20 = vsel %vm393_vm1, %v623_v28, 0.0 }
 0x134   : > { %660 = vadd.xlane.f32.xlu1 %v659_v63  ;;  %v593_v14 = vmax.f32 %v539_v6, 0.0  ;;  %v638_v23 = vsel %vm393_vm1, %v614_v16, 0.0  ;;  %v617_v25 = vmul.f32 %v1365_v31, %v594_v13  ;;  %v708_v39 = vlaneseq }
 0x135   : > { %v601_v29 = vmax.f32 %v579_v24, 0.0  ;;  %v662_v34 = vsel %vm393_vm1, %v622_v33, 0.0  ;;  %v625_v35 = vmul.f32 %v1365_v31, %v602_v27  ;;  %v1418_v46 = vstv %s674_s29 }
 0x136   : > { %v616_v26 = vmul.f32 %v1365_v31, %v593_v14  ;;  %v647_v30 = vsel %vm393_vm1, %v617_v25, 0.0  ;;  %v1413_v42 = vand.u32 127, %v708_v39  ;;  %v1415_v45 = vshrl.u32 %v708_v39, 7 }
 0x137   : > { %657 = vadd.xlane.f32.xlu0 %v656_v15  ;;  %v624_v36 = vmul.f32 %v1365_v31, %v601_v29  ;;  %v671_v37 = vsel %vm393_vm1, %v625_v35, 0.0 }
 0x138   : > { %633 = vadd.xlane.f32.xlu1 %v632_v10  ;;  %v644_v32 = vsel %vm393_vm1, %v616_v26, 0.0  ;;  %v714_v31 = vadd.s32 4294967288, %v1413_v42  ;;  %v721_v47 = vadd.s32 4294967280, %v1413_v42  ;;  %v712_v48 = vsub.s32 %v1413_v42, %v1415_v45 }
 0x139   : > { %v668_v38 = vsel %vm393_vm1, %v624_v36, 0.0  ;;  %v1427_v52 = vadd.s32 4294967224, %v1413_v42  ;;  %v728_v53 = vadd.s32 4294967272, %v1413_v42  ;;  %v1433_v56 = vadd.s32 4294967232, %v1413_v42 }
 0x13a   : > { %v717_v54 = vsub.s32 %v714_v31, %v1415_v45  ;;  %v724_v57 = vsub.s32 %v721_v47, %v1415_v45  ;;  %v735_v58 = vadd.s32 4294967264, %v1413_v42  ;;  %v1438_v60 = vadd.s32 4294967208, %v1413_v42 }
 0x13b   : > { %639 = vadd.xlane.f32.xlu0 %v638_v23  ;;  %v1441_v62 = vadd.s32 4294967216, %v1413_v42  ;;  %v742_v0 = vadd.s32 4294967256, %v1413_v42  ;;  %v773_v1 = vsub.s32 %v1427_v52, %v1415_v45  ;;  %v731_v2 = vsub.s32 %v728_v53, %v1415_v45 }
 0x13c   : > { %642 = vadd.xlane.f32.xlu1 %v641_v22  ;;  %v756_v6 = vadd.s32 4294967240, %v1413_v42  ;;  %v766_v7 = vsub.s32 %v1433_v56, %v1415_v45  ;;  %v738_v9 = vsub.s32 %v735_v58, %v1415_v45  ;;  %v749_v10 = vadd.s32 4294967248, %v1413_v42 }
 0x13d   : > { %v787_v12 = vsub.s32 %v1438_v60, %v1415_v45  ;;  %v780_v13 = vsub.s32 %v1441_v62, %v1415_v45  ;;  %v745_v14 = vsub.s32 %v742_v0, %v1415_v45  ;;  %v798_v23 = vadd.s32 4294967192, %v1413_v42 }
 0x13e   : > { %v759_v22 = vsub.s32 %v756_v6, %v1415_v45  ;;  %v752_v25 = vsub.s32 %v749_v10, %v1415_v45 }
 0x13f   : > { %645 = vadd.xlane.f32.xlu0 %v644_v32  ;;  %v801_v36 = vsub.s32 %v798_v23, %v1415_v45 }
 0x140   : > { %648 = vadd.xlane.f32.xlu1 %v647_v30  ;;  %v791_v30 = vadd.s32 4294967200, %v1413_v42 }
 0x143   : > { %663 = vadd.xlane.f32.xlu0 %v662_v34 }
 0x144   : > { %666 = vadd.xlane.f32.xlu1 %v665_v20 }
 0x147   : > { %669 = vadd.xlane.f32.xlu0 %v668_v38 }
 0x148   : > { %672 = vadd.xlane.f32.xlu1 %v671_v37  ;;  %v812_v37 = vadd.s32 4294967176, %v1413_v42 }
 0x14a   : > { %v815_v56 = vsub.s32 %v812_v37, %v1415_v45 }
 0x1b4   : > { %v631_v41 = vpop.xlane.xlu0 %630 }
 0x1b5   : > { %v1411_v40 = vpop.xlane.xlu1 %654  ;;  %v677_v55 = vadd.f32 %v1418_v46, %v631_v41 }
 0x1b6   : > { %v685_v35 = vadd.f32 %v1418_v46, %v1411_v40  ;;  %v794_v40 = vsub.s32 %v791_v30, %v1415_v45 }
 0x1b7   : > { %v718_v4 = vrot.slane %v677_v55, %v717_v54 }
 0x1b8   : > { %v628_v44 = vpop.xlane.xlu0 %627  ;;  %v774_v53 = vrot.slane %v685_v35, %v773_v1 }
 0x1b9   : > { %v637_v43 = vpop.xlane.xlu1 %636  ;;  %v676_v49 = vadd.f32 %v1418_v46, %v628_v44 }
 0x1ba   : > { %v679_v5 = vadd.f32 %v1418_v46, %v637_v43  ;;  %v805_v43 = vadd.s32 4294967184, %v1413_v42 }
 0x1bb   : > { %v713_v59 = vrot.slane %v676_v49, %v712_v48 }
 0x1bc   : > { %v652_v51 = vpop.xlane.xlu0 %651  ;;  %v732_v21 = vrot.slane %v679_v5, %v731_v2 }
 0x1bd   : > { %v1424_v50 = vpop.xlane.xlu1 %660  ;;  %v720_v11 = vsel %vm719_vm2, %v718_v4, %v713_v59  ;;  %v684_v32 = vadd.f32 %v1418_v46, %v652_v51 }
 0x1be   : > { %v687_v44 = vadd.f32 %v1418_v46, %v1424_v50 }
 0x1bf   : > { %v767_v49 = vrot.slane %v684_v32, %v766_v7 }
 0x1c0   : > { %v658_v63 = vpop.xlane.xlu0 %657  ;;  %v788_v58 = vrot.slane %v687_v44, %v787_v12 }
 0x1c1   : > { %v634_v61 = vpop.xlane.xlu1 %633  ;;  %v686_v38 = vadd.f32 %v1418_v46, %v658_v63 }
 0x1c2   : > { %v678_v3 = vadd.f32 %v1418_v46, %v634_v61 }
 0x1c3   : > { %v781_v50 = vrot.slane %v686_v38, %v780_v13 }
 0x1c4   : > { %v725_v8 = vrot.slane %v678_v3, %v724_v57  ;;  %v640_v16 = vpop.xlane.xlu0 %639  ;;  %v808_v57 = vsub.s32 %v805_v43, %v1415_v45 }
 0x1c5   : > { %v643_v15 = vpop.xlane.xlu1 %642  ;;  %v680_v19 = vadd.f32 %v1418_v46, %v640_v16 }
 0x1c6   : > { %v727_v17 = vsel %vm726_vm3, %v725_v8, %v720_v11  ;;  %v681_v18 = vadd.f32 %v1418_v46, %v643_v15 }
 0x1c7   : > { %v739_v24 = vrot.slane %v680_v19, %v738_v9  ;;  %v734_v27 = vsel %vm733_vm4, %v732_v21, %v727_v17 }
 0x1c8   : > { %v746_v26 = vrot.slane %v681_v18, %v745_v14  ;;  %v646_v29 = vpop.xlane.xlu0 %645 }
 0x1c9   : > { %v649_v28 = vpop.xlane.xlu1 %648  ;;  %v741_v33 = vsel %vm740_vm5, %v739_v24, %v734_v27  ;;  %v682_v34 = vadd.f32 %v1418_v46, %v646_v29 }
 0x1ca   : > { %v683_v20 = vadd.f32 %v1418_v46, %v649_v28  ;;  %v748_v31 = vsel %vm747_vm6, %v746_v26, %v741_v33 }
 0x1cb   : > { %v753_v41 = vrot.slane %v682_v34, %v752_v25 }
 0x1cc   : > { %v760_v39 = vrot.slane %v683_v20, %v759_v22  ;;  %v664_v48 = vpop.xlane.xlu0 %663 }
 0x1cd   : > { %v667_v47 = vpop.xlane.xlu1 %666  ;;  %v755_v51 = vsel %vm754_vm7, %v753_v41, %v748_v31  ;;  %v688_v52 = vadd.f32 %v1418_v46, %v664_v48 }
 0x1ce   : > { %v762_v54 = vsel %vm761_vm8, %v760_v39, %v755_v51  ;;  %v689_v42 = vadd.f32 %v1418_v46, %v667_v47 }
 0x1cf   : > { %v769_v55 = vsel %vm768_vm9, %v767_v49, %v762_v54  ;;  %v795_v63 = vrot.slane %v688_v52, %v794_v40 }
 0x1d0   : > { %v776_v59 = vsel %vm775_vm10, %v774_v53, %v769_v55  ;;  %v670_v61 = vpop.xlane.xlu0 %669  ;;  %v802_v2 = vrot.slane %v689_v42, %v801_v36 }
 0x1d1   : > { %v673_v60 = vpop.xlane.xlu1 %672  ;;  %v783_v62 = vsel %vm782_vm11, %v781_v50, %v776_v59  ;;  %v690_v1 = vadd.f32 %v1418_v46, %v670_v61 }
 0x1d2   : > { %v691_v0 = vadd.f32 %v1418_v46, %v673_v60  ;;  %v790_v3 = vsel %vm789_vm12, %v788_v58, %v783_v62 }
 0x1d3   : > { %v797_v45 = vsel %vm796_vm13, %v795_v63, %v790_v3  ;;  %v809_v5 = vrot.slane %v690_v1, %v808_v57 }
 0x1d4   : > { %v816_v4 = vrot.slane %v691_v0, %v815_v56  ;;  %v804_v6 = vsel %vm803_vm14, %v802_v2, %v797_v45 }
 0x1d5   : > { %v811_v7 = vsel %vm810_vm15, %v809_v5, %v804_v6 }
 0x1d6   : > { %v818_v46 = vsel %vm817_vm0, %v816_v4, %v811_v7 }
 0x1d7   : > { %820 = vst [vmem:[%s1572_s23] sm:$0x1] %v818_v46 }
 0x1d8   : > { %1059 = shalt.err (!%p1056_p8)
}
 0x1d9   : > { %s1060_s27 = scalar_lea.hbm %s1495_s25, 16  ;;  %s1064_s21 = scalar_lea.hbm %s1575_s17, 32 }
 0x1da   : > { %p1061_p9 = scmp.ne.s32.totalorder %s1495_s25, %s1060_s27  ;;  %p1065_p0 = scmp.lt.s32.totalorder %s1495_s25, %s1575_s17 }
 0x1db   : > { %p1066_p1 = scmp.lt.s32.totalorder %s1064_s21, %s1060_s27 }
 0x1dc   : > { %p1062_p12 = pnand %p1061_p9, %p1204_p10 }
 0x1dd   : > { %p1067_p2 = por %p1066_p1, %p1065_p0 }
 0x1de   : > { %p1063_p13 = pneg %p1062_p12 }
 0x1e0   : > { %p1068_p3 = pnand %p1067_p2, %p1063_p13 }
 0x1e2   : > { %1071 = shalt.err (!%p1068_p3)
}
 0x1e3   : > { %986 = dma.vmem_to_hbm [thread:$0]  (%p1204_p10), %s835_s6, 16, %s1495_s25, %s822_s11  }
 0x1e4 PF: > { %s1577_s16 = sld [smem:[#allocation13_spill]] }
 0x1e5   : > { %s1578_s30 = sld [smem:[#allocation10_spill]] }
 0x1ea   : > { %p992_p4 = scmp.ge.s32.totalorder %s1577_s16, 2 }
 0x1eb   : > { %s846_s28 = sand.u32 1, %s1578_s30  }
 0x1ec   : > { %p989_p5 = pnand %p992_p4, %p1208_p11  ;;  %s847_s29 = scalar_lea.sflag [#allocation7], %s846_s28 }
 0x1ee   : > { %p990_p6 = pneg %p989_p5 }
 0x1f0   : > { %1095 = dma.done.wait (%p990_p6), %s847_s29, 16  }
 0x1f1   : > { %1097 = vsyncadd (%p990_p6), %s847_s29, 4294967280  ;;  %s1580_s9 = sld [smem:[#allocation15_spill]] }
 0x1f2   : > { %s1581_s0 = sld [smem:[#allocation11_spill]] }
 0x1f3   : > { %s1582_s8 = sld [smem:[#allocation12_spill]] }
 0x1f4   : > { %s1583_s6 = sld [smem:[#allocation16_spill]] }
 0x1f7   : > { %p24_p7 = scmp.ge.s32.totalorder %s1580_s9, 4  }
 0x1f9   :  { %26 = sbr.rel (!%p24_p7) target bundleno = 19 (0x13), region = 111 }
 0x1fe   :  { %851 = vsyncpa [#allocation7], 1 }
 0x1ff   :  { %853 = vsyncpa [#allocation7 + $0x1], 1 }

</bundles_post_ra>
